<compile_context>
chip_gen: v7x
topology: tpu7x:2x2x1
jax: 0.10.0
libtpu: 0.0.40
codegen_flags: <defaults>
</compile_context>

<pallas_src>
import functools

import jax
import jax.numpy as jnp
from jax.experimental import pallas as pl
from jax.experimental.pallas import tpu as pltpu

EPS = 1e-5

# Row layout of the persistent (8, Hp) f32 VMEM scratch used by the tiled path.
_SUM1, _SSQ1, _SUM2, _SSQ2, _SCL1, _SHF1, _SCL2, _SHF2 = range(8)


def _round_up(v, m):
    return (v + m - 1) // m * m


def _vmem_budget_bytes():
    """~85% of physical per-core VMEM (v5e/v6e: 128 MiB, v7x: 64 MiB)."""
    cap = None
    try:
        cap = int(getattr(pltpu.get_tpu_info(), "vmem_capacity_bytes", 0)) or None
    except Exception:
        cap = None
    if cap is None:
        kind = ""
        try:
            kind = jax.devices()[0].device_kind.lower()
        except Exception:
            pass
        cap = (64 << 20) if "v7" in kind else (128 << 20)
    return max(16 << 20, int(cap * 0.85))


# ---------------------------------------------------------------------------
# Fast path: everything resident in VMEM -- single grid step, no recompute.
# ---------------------------------------------------------------------------
def _resident_kernel(x_ref, w1_ref, w2_ref, w3_ref, vec_ref, b3_ref, out_ref,
                     *, n_valid, needs_mask):
    inv_n = 1.0 / float(n_valid)
    rows = x_ref.shape[0]

    if needs_mask:
        row = jax.lax.broadcasted_iota(jnp.int32, (rows, 1), 0)
        row_mask = (row < n_valid).astype(jnp.float32)

    def bn_fold(h, g_row, b_row):
        hm = h * row_mask if needs_mask else h
        mean = jnp.sum(hm, axis=0, keepdims=True) * inv_n
        var = jnp.maximum(
            jnp.sum(hm * hm, axis=0, keepdims=True) * inv_n - mean * mean, 0.0)
        scale = vec_ref[g_row:g_row + 1, :] * jax.lax.rsqrt(var + EPS)
        shift = vec_ref[b_row:b_row + 1, :] - mean * scale
        return (h * scale + shift).astype(jnp.bfloat16)

    # GradientReversal is the identity in the forward pass.
    h1 = jnp.dot(x_ref[...], w1_ref[...],
                 preferred_element_type=jnp.float32) + vec_ref[0:1, :]   # b1
    h1 = jnp.maximum(h1, 0.0)
    z1 = bn_fold(h1, 1, 2)                                               # g1, be1

    h2 = jnp.dot(z1, w2_ref[...],
                 preferred_element_type=jnp.float32) + vec_ref[3:4, :]   # b2
    h2 = jnp.maximum(h2, 0.0)
    z2 = bn_fold(h2, 4, 5)                                               # g2, be2

    out = jnp.dot(z2, w3_ref[...],
                  preferred_element_type=jnp.float32) + b3_ref[...]
    out_ref[...] = out.astype(out_ref.dtype)


# ---------------------------------------------------------------------------
# General path: 3-phase sweep over batch tiles (BN needs full-batch statistics).
# ---------------------------------------------------------------------------
def _phased_kernel(x_ref, w1_ref, w2_ref, w3_ref, vec_ref, b3_ref,
                   out_ref, acc_ref, *, n_valid, tile_rows, needs_mask):
    phase = pl.program_id(0)
    tile = pl.program_id(1)
    last_tile = pl.num_programs(1) - 1
    inv_n = 1.0 / float(n_valid)

    @pl.when((phase == 0) & (tile == 0))
    def _init():
        acc_ref[...] = jnp.zeros_like(acc_ref)

    def accum(row0, h):
        # Two adjacent single-row RMWs on the scratch (kept split; avoids relying
        # on a sublane-dim concat lowering for a marginal store-slot saving).
        acc_ref[row0:row0 + 1, :] += jnp.sum(h, axis=0, keepdims=True)
        acc_ref[row0 + 1:row0 + 2, :] += jnp.sum(h * h, axis=0, keepdims=True)

    def accum_stats(row0, h):
        # Only the last batch tile contains zero-padded rows; every other tile
        # takes the unmasked (VALU-cheap) path.
        if needs_mask:
            @pl.when(tile == last_tile)
            def _masked():
                row = tile * tile_rows + jax.lax.broadcasted_iota(
                    jnp.int32, (tile_rows, 1), 0)
                accum(row0, h * (row < n_valid).astype(jnp.float32))

            @pl.when(tile != last_tile)
            def _unmasked():
                accum(row0, h)
        else:
            accum(row0, h)

    # ---- layer 1: Linear -> ReLU (recomputed each phase) --------------------
    h1 = jnp.dot(x_ref[...], w1_ref[...],
                 preferred_element_type=jnp.float32) + vec_ref[0:1, :]   # b1
    h1 = jnp.maximum(h1, 0.0)

    @pl.when(phase == 0)
    def _accum_bn1():
        accum_stats(_SUM1, h1)

    @pl.when(phase >= 1)
    def _phase12():
        # Fold BN1 into a fused (scale, shift) once, at the start of phase 1.
        @pl.when((phase == 1) & (tile == 0))
        def _fold_bn1():
            mean1 = acc_ref[_SUM1:_SUM1 + 1, :] * inv_n
            var1 = jnp.maximum(
                acc_ref[_SSQ1:_SSQ1 + 1, :] * inv_n - mean1 * mean1, 0.0)
            scale1 = vec_ref[1:2, :] * jax.lax.rsqrt(var1 + EPS)        # gamma1
            acc_ref[_SCL1:_SCL1 + 1, :] = scale1
            acc_ref[_SHF1:_SHF1 + 1, :] = vec_ref[2:3, :] - mean1 * scale1  # beta1

        z1 = (h1 * acc_ref[_SCL1:_SCL1 + 1, :]
              + acc_ref[_SHF1:_SHF1 + 1, :]).astype(jnp.bfloat16)

        # ---- layer 2: Linear -> ReLU ----------------------------------------
        h2 = jnp.dot(z1, w2_ref[...],
                     preferred_element_type=jnp.float32) + vec_ref[3:4, :]  # b2
        h2 = jnp.maximum(h2, 0.0)

        @pl.when(phase == 1)
        def _accum_bn2():
            accum_stats(_SUM2, h2)

        @pl.when(phase == 2)
        def _final():
            @pl.when(tile == 0)
            def _fold_bn2():
                mean2 = acc_ref[_SUM2:_SUM2 + 1, :] * inv_n
                var2 = jnp.maximum(
                    acc_ref[_SSQ2:_SSQ2 + 1, :] * inv_n - mean2 * mean2, 0.0)
                scale2 = vec_ref[4:5, :] * jax.lax.rsqrt(var2 + EPS)    # gamma2
                acc_ref[_SCL2:_SCL2 + 1, :] = scale2
                acc_ref[_SHF2:_SHF2 + 1, :] = vec_ref[5:6, :] - mean2 * scale2

            z2 = (h2 * acc_ref[_SCL2:_SCL2 + 1, :]
                  + acc_ref[_SHF2:_SHF2 + 1, :]).astype(jnp.bfloat16)

            # ---- output layer: Linear ---------------------------------------
            out = jnp.dot(z2, w3_ref[...],
                          preferred_element_type=jnp.float32) + b3_ref[...]
            out_ref[...] = out.astype(out_ref.dtype)


# ---------------------------------------------------------------------------
# Host-side wrappers.
# ---------------------------------------------------------------------------
def _pad_operands(x, params, n_p, in_p, hid_p, out_p):
    """Zero-pad and cast matmul operands to bf16 (f32 MXU accumulation in-kernel).
    Zero padding keeps padded feature lanes exactly zero through every layer."""
    bf, f32 = jnp.bfloat16, jnp.float32
    N, in_dim = x.shape
    hidden_dim = params["w1"].shape[0]
    out_dim = params["w3"].shape[0]

    xp = jnp.zeros((n_p, in_p), bf).at[:N, :in_dim].set(x.astype(bf))
    w1 = jnp.zeros((in_p, hid_p), bf).at[:in_dim, :hidden_dim].set(
        params["w1"].T.astype(bf))
    w2 = jnp.zeros((hid_p, hid_p), bf).at[:hidden_dim, :hidden_dim].set(
        params["w2"].T.astype(bf))
    w3 = jnp.zeros((hid_p, out_p), bf).at[:hidden_dim, :out_dim].set(
        params["w3"].T.astype(bf))

    # Pack the six per-layer (hidden,) vectors into one (8, hid_p) f32 slab:
    # rows = [b1, g1, be1, b2, g2, be2, 0, 0].
    vec = jnp.zeros((8, hid_p), f32)
    for r, name in enumerate(("b1", "g1", "be1", "b2", "g2", "be2")):
        vec = vec.at[r, :hidden_dim].set(params[name].astype(f32))
    b3 = jnp.zeros((1, out_p), f32).at[0, :out_dim].set(params["b3"].astype(f32))
    return xp, w1, w2, w3, vec, b3


def _run_resident(xp, w1, w2, w3, vec, b3, N, out_dim,
                  n_p, in_p, hid_p, out_p, vmem_limit):
    kernel = functools.partial(_resident_kernel, n_valid=N,
                               needs_mask=(n_p != N))
    flops = 2 * n_p * (in_p * hid_p + hid_p * hid_p + hid_p * out_p)
    bytes_accessed = (n_p * in_p * 2
                      + 2 * (in_p * hid_p + hid_p * hid_p + hid_p * out_p)
                      + 4 * (8 * hid_p + out_p) + 4 * n_p * out_p)
    cost = pl.CostEstimate(flops=flops, transcendentals=2 * hid_p,
                           bytes_accessed=bytes_accessed)

    out_padded = pl.pallas_call(
        kernel,
        out_shape=jax.ShapeDtypeStruct((n_p, out_p), jnp.float32),
        grid_spec=pltpu.PrefetchScalarGridSpec(
            num_scalar_prefetch=0,
            grid=(1,),
            in_specs=[
                pl.BlockSpec((n_p, in_p), lambda i: (0, 0)),
                pl.BlockSpec((in_p, hid_p), lambda i: (0, 0)),
                pl.BlockSpec((hid_p, hid_p), lambda i: (0, 0)),
                pl.BlockSpec((hid_p, out_p), lambda i: (0, 0)),
                pl.BlockSpec((8, hid_p), lambda i: (0, 0)),
                pl.BlockSpec((1, out_p), lambda i: (0, 0)),
            ],
            out_specs=pl.BlockSpec((n_p, out_p), lambda i: (0, 0)),
        ),
        compiler_params=pltpu.CompilerParams(
            dimension_semantics=("arbitrary",),
            vmem_limit_bytes=int(vmem_limit)),
        cost_estimate=cost,
    )(xp, w1, w2, w3, vec, b3)
    return out_padded[:N, :out_dim]


def _run_phased(xp, w1, w2, w3, vec, b3, N, out_dim,
                n_p, in_p, hid_p, out_p, tn, vmem_limit, single_buffer):
    num_tiles = n_p // tn
    kernel = functools.partial(_phased_kernel, n_valid=N, tile_rows=tn,
                               needs_mask=(n_p != N))

    def const_spec(shape):
        # Invariant operands: single-buffer them (their block index never changes)
        # to halve resident-weight VMEM; critical on v7x's 64 MiB budget.
        if single_buffer:
            return pl.BlockSpec(shape, lambda p, t: (0, 0),
                                pipeline_mode=pl.Buffered(1))
        return pl.BlockSpec(shape, lambda p, t: (0, 0))

    # Advisory cost estimate (layer 1 computed 3x, layer 2 2x, layer 3 1x).
    flops = 2 * n_p * (3 * in_p * hid_p + 2 * hid_p * hid_p + hid_p * out_p)
    bytes_accessed = (3 * n_p * in_p * 2
                      + 2 * (in_p * hid_p + hid_p * hid_p + hid_p * out_p)
                      + 4 * (8 * hid_p + out_p)
                      + 4 * n_p * out_p)
    cost = pl.CostEstimate(flops=flops, transcendentals=2 * hid_p,
                           bytes_accessed=bytes_accessed)

    out_padded = pl.pallas_call(
        kernel,
        out_shape=jax.ShapeDtypeStruct((n_p, out_p), jnp.float32),
        grid_spec=pltpu.PrefetchScalarGridSpec(
            num_scalar_prefetch=0,
            grid=(3, num_tiles),   # (phase, batch tile); phase must be outermost
            in_specs=[
                pl.BlockSpec((tn, in_p), lambda p, t: (t, 0)),   # x (tiled over N)
                const_spec((in_p, hid_p)),                       # w1
                const_spec((hid_p, hid_p)),                      # w2
                const_spec((hid_p, out_p)),                      # w3
                const_spec((8, hid_p)),                          # packed b/gamma/beta
                const_spec((1, out_p)),                          # b3
            ],
            # Output is only produced in phase 2; park the block at index 0 during
            # the statistics sweeps so no redundant writeback DMA is issued.
            # NOTE: this (and the cross-tile BN scratch) relies on strictly
            # sequential grid execution -- keep both axes "arbitrary".
            out_specs=pl.BlockSpec((tn, out_p), lambda p, t: ((p // 2) * t, 0)),
            scratch_shapes=[pltpu.VMEM((8, hid_p), jnp.float32)],
        ),
        compiler_params=pltpu.CompilerParams(
            dimension_semantics=("arbitrary", "arbitrary"),
            vmem_limit_bytes=int(vmem_limit)),
        cost_estimate=cost,
    )(xp, w1, w2, w3, vec, b3)
    return out_padded[:N, :out_dim]


def domain_alignment(x, params, *, tile_rows=None, force_tiled=False):
    """Fused DomainAlignment forward.  x: (N, in_dim) f32; params follow PyTorch
    conventions (Linear weight is (out, in))."""
    N, in_dim = x.shape
    hidden_dim = params["w1"].shape[0]
    out_dim = params["w3"].shape[0]

    in_p = _round_up(in_dim, 128)
    hid_p = _round_up(hidden_dim, 128)
    out_p = _round_up(out_dim, 128)

    budget = _vmem_budget_bytes()
    weight_bytes = 2 * (in_p * hid_p + hid_p * hid_p + hid_p * out_p)  # bf16
    const_bytes = 4 * (8 * hid_p + out_p)

    # ---- fully-resident single-shot path ------------------------------------
    n_single = _round_up(max(N, 8), 8)
    resident_bytes = (2 * (weight_bytes + const_bytes
                           + n_single * in_p * 2        # x (bf16)
                           + n_single * out_p * 4)      # out (f32)
                      + 6 * n_single * hid_p * 4)       # live intermediates
    if (not force_tiled) and resident_bytes + (8 << 20) <= budget:
        xp, w1, w2, w3, vec, b3 = _pad_operands(
            x, params, n_single, in_p, hid_p, out_p)
        vmem_limit = min(max(resident_bytes + (8 << 20), 32 << 20), budget)
        return _run_resident(xp, w1, w2, w3, vec, b3, N, out_dim,
                             n_single, in_p, hid_p, out_p, vmem_limit)

    # ---- 3-phase batch-tiled path --------------------------------------------
    per_row = 2 * in_p * 2 + 2 * out_p * 4 + 8 * hid_p * 4
    if tile_rows is None:
        avail = budget - weight_bytes - 2 * const_bytes - (6 << 20)
        tn_fit = max(8, (avail // per_row) // 8 * 8) if avail > 0 else 8
        tile_rows = min(512, tn_fit)   # v6e/v7x MXU is 256-wide: keep M >= 256
    tn = max(8, _round_up(min(tile_rows, _round_up(N, 8)), 8))
    n_p = _round_up(N, tn)

    xp, w1, w2, w3, vec, b3 = _pad_operands(x, params, n_p, in_p, hid_p, out_p)

    vmem_est = (2 * tn * in_p * 2 + 2 * tn * out_p * 4
                + weight_bytes + 2 * const_bytes
                + 4 * 8 * hid_p + 8 * tn * hid_p * 4 + (4 << 20))
    vmem_limit = min(max(vmem_est, 32 << 20), budget)

    try:
        return _run_phased(xp, w1, w2, w3, vec, b3, N, out_dim, n_p, in_p,
                           hid_p, out_p, tn, vmem_limit, single_buffer=True)
    except Exception:
        # pl.Buffered(1) not supported by this Pallas grid pipeline; fall back to
        # default double-buffered invariant operands.
        return _run_phased(xp, w1, w2, w3, vec, b3, N, out_dim, n_p, in_p,
                           hid_p, out_p, tn, vmem_limit, single_buffer=False)


# ---------------------------------------------------------------------------
# Reference + parameters (PyTorch-layout) for the self-test.
# ---------------------------------------------------------------------------
def _reference(x, p):
    """Mixed-precision reference matching the kernel numerics (bf16 matmul
    operands, f32 accumulation, training-mode BatchNorm1d)."""
    bf = jnp.bfloat16

    def bn(h, g, b):
        m = jnp.mean(h, axis=0, keepdims=True)
        v = jnp.mean((h - m) ** 2, axis=0, keepdims=True)
        return (h - m) / jnp.sqrt(v + EPS) * g + b

    def lin(h, w, b):
        return jnp.dot(h.astype(bf), w.T.astype(bf),
                       preferred_element_type=jnp.float32) + b

    h = jnp.maximum(lin(x, p["w1"], p["b1"]), 0.0)
    h = bn(h, p["g1"], p["be1"])
    h = jnp.maximum(lin(h, p["w2"], p["b2"]), 0.0)
    h = bn(h, p["g2"], p["be2"])
    return lin(h, p["w3"], p["b3"])


def make_params(key, in_dim, hidden_dim, out_dim):
    ks = jax.random.split(key, 6)
    scale1 = 1.0 / jnp.sqrt(in_dim)
    scaleh = 1.0 / jnp.sqrt(hidden_dim)
    return {
        "w1": jax.random.uniform(ks[0], (hidden_dim, in_dim), jnp.float32, -scale1, scale1),
        "b1": jax.random.uniform(ks[1], (hidden_dim,), jnp.float32, -scale1, scale1),
        "g1": jnp.ones((hidden_dim,), jnp.float32),
        "be1": jnp.zeros((hidden_dim,), jnp.float32),
        "w2": jax.random.uniform(ks[2], (hidden_dim, hidden_dim), jnp.float32, -scaleh, scaleh),
        "b2": jax.random.uniform(ks[3], (hidden_dim,), jnp.float32, -scaleh, scaleh),
        "g2": jnp.ones((hidden_dim,), jnp.float32),
        "be2": jnp.zeros((hidden_dim,), jnp.float32),
        "w3": jax.random.uniform(ks[4], (out_dim, hidden_dim), jnp.float32, -scaleh, scaleh),
        "b3": jax.random.uniform(ks[5], (out_dim,), jnp.float32, -scaleh, scaleh),
    }


if __name__ == "__main__":
    N, in_dim, hidden_dim, out_dim = 20, 16, 32, 2
    key = jax.random.PRNGKey(0)
    kx, kp = jax.random.split(key)

    x = jax.random.normal(kx, (N, in_dim), jnp.float32)
    params = make_params(kp, in_dim, hidden_dim, out_dim)
    ref = _reference(x, params)

    # 1) Default dispatch -> fully-resident single-shot path (fits easily in VMEM).
    out_fast = jax.block_until_ready(domain_alignment(x, params))
    assert out_fast.shape == (N, out_dim)
    assert jnp.allclose(out_fast, ref, atol=2e-2, rtol=2e-2), float(
        jnp.max(jnp.abs(out_fast - ref)))

    # 2) Forced 3-phase tiled path (tile_rows=8 -> 3 batch tiles); exercises the
    #    cross-tile BN statistics reduction and padded-row masking (N=20 -> 24).
    out_tiled = jax.block_until_ready(
        domain_alignment(x, params, tile_rows=8, force_tiled=True))
    assert out_tiled.shape == (N, out_dim)
    assert jnp.allclose(out_tiled, ref, atol=2e-2, rtol=2e-2), float(
        jnp.max(jnp.abs(out_tiled - ref)))

    print("KERNEL_OK")
</pallas_src>

<mosaic_0001>
module attributes {stable_mosaic.version = 11 : i64} {
  func.func @_resident_kernel(%arg0: i32, %arg1: memref<24x128xbf16, #tpu.memory_space<vmem>>, %arg2: memref<128x128xbf16, #tpu.memory_space<vmem>>, %arg3: memref<128x128xbf16, #tpu.memory_space<vmem>>, %arg4: memref<128x128xbf16, #tpu.memory_space<vmem>>, %arg5: memref<8x128xf32, #tpu.memory_space<vmem>>, %arg6: memref<1x128xf32, #tpu.memory_space<vmem>>, %arg7: memref<24x128xf32, #tpu.memory_space<vmem>>) attributes {dimension_semantics = [#tpu.dimension_semantics<arbitrary>], iteration_bounds = array<i64: 1>, scalar_prefetch = 0 : i64, scratch_operands = 0 : i64, tpu.core_type = #tpu.core_type<tc>, window_params = [{pipeline_mode = #tpu.pipeline_mode<synchronous>, transform_indices = @transform_0, window_bounds = array<i64: 24, 128>}, {pipeline_mode = #tpu.pipeline_mode<synchronous>, transform_indices = @transform_1, window_bounds = array<i64: 128, 128>}, {pipeline_mode = #tpu.pipeline_mode<synchronous>, transform_indices = @transform_2, window_bounds = array<i64: 128, 128>}, {pipeline_mode = #tpu.pipeline_mode<synchronous>, transform_indices = @transform_3, window_bounds = array<i64: 128, 128>}, {pipeline_mode = #tpu.pipeline_mode<synchronous>, transform_indices = @transform_4, window_bounds = array<i64: 8, 128>}, {pipeline_mode = #tpu.pipeline_mode<synchronous>, transform_indices = @transform_5, window_bounds = array<i64: 1, 128>}, {pipeline_mode = #tpu.pipeline_mode<synchronous>, transform_indices = @transform_6, window_bounds = array<i64: 24, 128>}]} {
    %0 = tpu.iota {dimensions = array<i32: 0>} : vector<24x1xi32>
    %c20_i32 = arith.constant 20 : i32
    %1 = vector.broadcast %c20_i32 : i32 to vector<24x1xi32>
    %2 = arith.cmpi slt, %0, %1 : vector<24x1xi32>
    %3 = arith.extui %2 : vector<24x1xi1> to vector<24x1xi32>
    %4 = arith.sitofp %3 : vector<24x1xi32> to vector<24x1xf32>
    %c0 = arith.constant 0 : index
    %c0_0 = arith.constant 0 : index
    %5 = vector.load %arg1[%c0, %c0_0] : memref<24x128xbf16, #tpu.memory_space<vmem>>, vector<24x128xbf16>
    %c0_1 = arith.constant 0 : index
    %c0_2 = arith.constant 0 : index
    %6 = vector.load %arg2[%c0_1, %c0_2] : memref<128x128xbf16, #tpu.memory_space<vmem>>, vector<128x128xbf16>
    %cst = arith.constant dense<0.000000e+00> : vector<24x128xf32>
    %7 = tpu.matmul %5, %6, %cst {dimension_numbers = #tpu.dot_dimension_numbers<[1], [0], [0], [1], [0, 0, 1, 1], [], []>} : vector<24x128xbf16>, vector<128x128xbf16>, vector<24x128xf32> -> vector<24x128xf32>
    %c0_3 = arith.constant 0 : index
    %c0_4 = arith.constant 0 : index
    %8 = vector.load %arg5[%c0_3, %c0_4] : memref<8x128xf32, #tpu.memory_space<vmem>>, vector<1x128xf32>
    %9 = vector.broadcast %8 : vector<1x128xf32> to vector<24x128xf32>
    %10 = arith.addf %7, %9 : vector<24x128xf32>
    %cst_5 = arith.constant 0.000000e+00 : f32
    %11 = vector.broadcast %cst_5 : f32 to vector<24x128xf32>
    %12 = arith.maximumf %10, %11 : vector<24x128xf32>
    %13 = vector.broadcast %4 : vector<24x1xf32> to vector<24x128xf32>
    %14 = arith.mulf %12, %13 : vector<24x128xf32>
    %cst_6 = arith.constant dense<0.000000e+00> : vector<128xf32>
    %15 = vector.multi_reduction <add>, %14, %cst_6 [0] : vector<24x128xf32> to vector<128xf32>
    %16 = vector.shape_cast %15 : vector<128xf32> to vector<1x128xf32>
    %cst_7 = arith.constant 5.000000e-02 : f32
    %17 = vector.broadcast %cst_7 : f32 to vector<1x128xf32>
    %18 = arith.mulf %16, %17 : vector<1x128xf32>
    %19 = arith.mulf %14, %14 : vector<24x128xf32>
    %cst_8 = arith.constant dense<0.000000e+00> : vector<128xf32>
    %20 = vector.multi_reduction <add>, %19, %cst_8 [0] : vector<24x128xf32> to vector<128xf32>
    %21 = vector.shape_cast %20 : vector<128xf32> to vector<1x128xf32>
    %cst_9 = arith.constant 5.000000e-02 : f32
    %22 = vector.broadcast %cst_9 : f32 to vector<1x128xf32>
    %23 = arith.mulf %21, %22 : vector<1x128xf32>
    %24 = arith.mulf %18, %18 : vector<1x128xf32>
    %25 = arith.subf %23, %24 : vector<1x128xf32>
    %cst_10 = arith.constant 0.000000e+00 : f32
    %26 = vector.broadcast %cst_10 : f32 to vector<1x128xf32>
    %27 = arith.maximumf %25, %26 : vector<1x128xf32>
    %c1 = arith.constant 1 : index
    %c0_11 = arith.constant 0 : index
    %28 = vector.load %arg5[%c1, %c0_11] : memref<8x128xf32, #tpu.memory_space<vmem>>, vector<1x128xf32>
    %cst_12 = arith.constant 9.99999974E-6 : f32
    %29 = vector.broadcast %cst_12 : f32 to vector<1x128xf32>
    %30 = arith.addf %27, %29 : vector<1x128xf32>
    %31 = math.rsqrt %30 : vector<1x128xf32>
    %32 = arith.mulf %28, %31 : vector<1x128xf32>
    %c2 = arith.constant 2 : index
    %c0_13 = arith.constant 0 : index
    %33 = vector.load %arg5[%c2, %c0_13] : memref<8x128xf32, #tpu.memory_space<vmem>>, vector<1x128xf32>
    %34 = arith.mulf %18, %32 : vector<1x128xf32>
    %35 = arith.subf %33, %34 : vector<1x128xf32>
    %36 = vector.broadcast %32 : vector<1x128xf32> to vector<24x128xf32>
    %37 = arith.mulf %12, %36 : vector<24x128xf32>
    %38 = vector.broadcast %35 : vector<1x128xf32> to vector<24x128xf32>
    %39 = arith.addf %37, %38 : vector<24x128xf32>
    %40 = arith.truncf %39 : vector<24x128xf32> to vector<24x128xbf16>
    %c0_14 = arith.constant 0 : index
    %c0_15 = arith.constant 0 : index
    %41 = vector.load %arg3[%c0_14, %c0_15] : memref<128x128xbf16, #tpu.memory_space<vmem>>, vector<128x128xbf16>
    %cst_16 = arith.constant dense<0.000000e+00> : vector<24x128xf32>
    %42 = tpu.matmul %40, %41, %cst_16 {dimension_numbers = #tpu.dot_dimension_numbers<[1], [0], [0], [1], [0, 0, 1, 1], [], []>} : vector<24x128xbf16>, vector<128x128xbf16>, vector<24x128xf32> -> vector<24x128xf32>
    %c3 = arith.constant 3 : index
    %c0_17 = arith.constant 0 : index
    %43 = vector.load %arg5[%c3, %c0_17] : memref<8x128xf32, #tpu.memory_space<vmem>>, vector<1x128xf32>
    %44 = vector.broadcast %43 : vector<1x128xf32> to vector<24x128xf32>
    %45 = arith.addf %42, %44 : vector<24x128xf32>
    %cst_18 = arith.constant 0.000000e+00 : f32
    %46 = vector.broadcast %cst_18 : f32 to vector<24x128xf32>
    %47 = arith.maximumf %45, %46 : vector<24x128xf32>
    %48 = vector.broadcast %4 : vector<24x1xf32> to vector<24x128xf32>
    %49 = arith.mulf %47, %48 : vector<24x128xf32>
    %cst_19 = arith.constant dense<0.000000e+00> : vector<128xf32>
    %50 = vector.multi_reduction <add>, %49, %cst_19 [0] : vector<24x128xf32> to vector<128xf32>
    %51 = vector.shape_cast %50 : vector<128xf32> to vector<1x128xf32>
    %cst_20 = arith.constant 5.000000e-02 : f32
    %52 = vector.broadcast %cst_20 : f32 to vector<1x128xf32>
    %53 = arith.mulf %51, %52 : vector<1x128xf32>
    %54 = arith.mulf %49, %49 : vector<24x128xf32>
    %cst_21 = arith.constant dense<0.000000e+00> : vector<128xf32>
    %55 = vector.multi_reduction <add>, %54, %cst_21 [0] : vector<24x128xf32> to vector<128xf32>
    %56 = vector.shape_cast %55 : vector<128xf32> to vector<1x128xf32>
    %cst_22 = arith.constant 5.000000e-02 : f32
    %57 = vector.broadcast %cst_22 : f32 to vector<1x128xf32>
    %58 = arith.mulf %56, %57 : vector<1x128xf32>
    %59 = arith.mulf %53, %53 : vector<1x128xf32>
    %60 = arith.subf %58, %59 : vector<1x128xf32>
    %cst_23 = arith.constant 0.000000e+00 : f32
    %61 = vector.broadcast %cst_23 : f32 to vector<1x128xf32>
    %62 = arith.maximumf %60, %61 : vector<1x128xf32>
    %c4 = arith.constant 4 : index
    %c0_24 = arith.constant 0 : index
    %63 = vector.load %arg5[%c4, %c0_24] : memref<8x128xf32, #tpu.memory_space<vmem>>, vector<1x128xf32>
    %cst_25 = arith.constant 9.99999974E-6 : f32
    %64 = vector.broadcast %cst_25 : f32 to vector<1x128xf32>
    %65 = arith.addf %62, %64 : vector<1x128xf32>
    %66 = math.rsqrt %65 : vector<1x128xf32>
    %67 = arith.mulf %63, %66 : vector<1x128xf32>
    %c5 = arith.constant 5 : index
    %c0_26 = arith.constant 0 : index
    %68 = vector.load %arg5[%c5, %c0_26] : memref<8x128xf32, #tpu.memory_space<vmem>>, vector<1x128xf32>
    %69 = arith.mulf %53, %67 : vector<1x128xf32>
    %70 = arith.subf %68, %69 : vector<1x128xf32>
    %71 = vector.broadcast %67 : vector<1x128xf32> to vector<24x128xf32>
    %72 = arith.mulf %47, %71 : vector<24x128xf32>
    %73 = vector.broadcast %70 : vector<1x128xf32> to vector<24x128xf32>
    %74 = arith.addf %72, %73 : vector<24x128xf32>
    %75 = arith.truncf %74 : vector<24x128xf32> to vector<24x128xbf16>
    %c0_27 = arith.constant 0 : index
    %c0_28 = arith.constant 0 : index
    %76 = vector.load %arg4[%c0_27, %c0_28] : memref<128x128xbf16, #tpu.memory_space<vmem>>, vector<128x128xbf16>
    %cst_29 = arith.constant dense<0.000000e+00> : vector<24x128xf32>
    %77 = tpu.matmul %75, %76, %cst_29 {dimension_numbers = #tpu.dot_dimension_numbers<[1], [0], [0], [1], [0, 0, 1, 1], [], []>} : vector<24x128xbf16>, vector<128x128xbf16>, vector<24x128xf32> -> vector<24x128xf32>
    %c0_30 = arith.constant 0 : index
    %c0_31 = arith.constant 0 : index
    %78 = vector.load %arg6[%c0_30, %c0_31] : memref<1x128xf32, #tpu.memory_space<vmem>>, vector<1x128xf32>
    %79 = vector.broadcast %78 : vector<1x128xf32> to vector<24x128xf32>
    %80 = arith.addf %77, %79 : vector<24x128xf32>
    %c0_32 = arith.constant 0 : index
    %c0_33 = arith.constant 0 : index
    %81 = vector.load %arg7[%c0_32, %c0_33] : memref<24x128xf32, #tpu.memory_space<vmem>>, vector<24x128xf32>
    tpu.vector_store %arg7[%c0_32, %c0_33], %80 {strides = array<i32>} : memref<24x128xf32, #tpu.memory_space<vmem>>, vector<24x128xf32>,
    return
  }
  func.func @transform_0(%arg0: i32) -> (i32, i32) {
    %c0_i32 = arith.constant 0 : i32
    %c0_i32_0 = arith.constant 0 : i32
    %c0_i32_1 = arith.constant 0 : i32
    return %c0_i32, %c0_i32_0 : i32, i32
  }
  func.func @transform_1(%arg0: i32) -> (i32, i32) {
    %c0_i32 = arith.constant 0 : i32
    %c0_i32_0 = arith.constant 0 : i32
    %c0_i32_1 = arith.constant 0 : i32
    return %c0_i32, %c0_i32_0 : i32, i32
  }
  func.func @transform_2(%arg0: i32) -> (i32, i32) {
    %c0_i32 = arith.constant 0 : i32
    %c0_i32_0 = arith.constant 0 : i32
    %c0_i32_1 = arith.constant 0 : i32
    return %c0_i32, %c0_i32_0 : i32, i32
  }
  func.func @transform_3(%arg0: i32) -> (i32, i32) {
    %c0_i32 = arith.constant 0 : i32
    %c0_i32_0 = arith.constant 0 : i32
    %c0_i32_1 = arith.constant 0 : i32
    return %c0_i32, %c0_i32_0 : i32, i32
  }
  func.func @transform_4(%arg0: i32) -> (i32, i32) {
    %c0_i32 = arith.constant 0 : i32
    %c0_i32_0 = arith.constant 0 : i32
    %c0_i32_1 = arith.constant 0 : i32
    return %c0_i32, %c0_i32_0 : i32, i32
  }
  func.func @transform_5(%arg0: i32) -> (i32, i32) {
    %c0_i32 = arith.constant 0 : i32
    %c0_i32_0 = arith.constant 0 : i32
    %c0_i32_1 = arith.constant 0 : i32
    return %c0_i32, %c0_i32_0 : i32, i32
  }
  func.func @transform_6(%arg0: i32) -> (i32, i32) {
    %c0_i32 = arith.constant 0 : i32
    %c0_i32_0 = arith.constant 0 : i32
    %c0_i32_1 = arith.constant 0 : i32
    return %c0_i32, %c0_i32_0 : i32, i32
  }
}

</mosaic_0001>

<bundles_post_ra>
// kernel: tpu_custom_call.1
= control target key start
LH: loop header
LB: loop body
LE: loop exit
PB: predicated region body
PF: predicated region fallthrough
CT: control target
= control target key end

     0   :  { %11 = vsyncpa [#allocation3], 0  ;;  %s1027_s0 = inlined_call_operand.hbm [shape: bf16[24,128], index: 0, kind: input, shape index: {}]   ;;  %s1028_s1 = inlined_call_operand.hbm [shape: bf16[128,128], index: 1, kind: input, shape index: {}]   ;;  %s1029_s2 = inlined_call_operand.hbm [shape: bf16[128,128], index: 2, kind: input, shape index: {}]   ;;  %s1030_s3 = inlined_call_operand.hbm [shape: bf16[128,128], index: 3, kind: input, shape index: {}]   ;;  %s1031_s4 = inlined_call_operand.vmem [shape: f32[8,128], index: 4, kind: input, shape index: {}]   ;;  %s1032_s5 = inlined_call_operand.vmem [shape: f32[1,128], index: 5, kind: input, shape index: {}]   ;;  %s1033_s6 = inlined_call_operand.hbm [shape: f32[24,128], index: 6, kind: output, shape index: {}]  }
   0x1   :  { %12 = vsyncpa [#allocation6], 0 }
   0x2   :  { %13 = vsyncpa [#allocation9], 0 }
   0x3   :  { %14 = vsyncpa [#allocation4], 0  ;;  %s865_s21 = smov [#allocation5]   ;;  %s866_s23 = smov [#allocation2]  }
   0x4   :  { %s32_s22 = sshll.u32 %s865_s21, 4  ;;  %s20_s24 = sshll.u32 %s866_s23, 4  ;;  %s33_s22 = int_to_ptr.vmem [resolvable:$true] %s32_s22  ;;  %s910_s24 = int_to_ptr.vmem [resolvable:$true] %s20_s24 }
   0x5   :  { %s747_s27 = scalar_lea.hbm %s1028_s1, 1024 }
   0x6   :  { %p748_p0 = scmp.ne.s32.totalorder %s1028_s1, %s747_s27  ;;  %p751_p1 = scmp.lt.u32.totalorder %s747_s27, %s1028_s1 }
   0x8   :  { %p753_p2 = pnand %p751_p1, %p748_p0 }
   0xa   :  { %756 = shalt.err (!%p753_p2)
}
   0xb   :  { %s757_s8 = scalar_lea.vmem %s33_s22, 1024  ;;  %p762_p4 = scmp.lt.s32.totalorder %s33_s22, %s33_s22 }
   0xc   :  { %p758_p3 = scmp.ne.s32.totalorder %s33_s22, %s757_s8  ;;  %p763_p5 = scmp.lt.s32.totalorder %s757_s8, %s757_s8 }
   0xe   :  { %p764_p6 = por %p763_p5, %p762_p4 }
  0x10   :  { %p765_p7 = pnand %p764_p6, %p758_p3 }
  0x12   :  { %768 = shalt.err (!%p765_p7)
}
  0x13   :  { %s867_s9 = smov 64   ;;  %s868_s10 = smov 4  }
  0x14   :  { %38 = dma.hbm_to_vmem [thread:$0]  %s1028_s1, 1024, %s33_s22, [#allocation6], %s867_s9, %s867_s9, %s868_s10  }
  0x15   :  { %s769_s15 = scalar_lea.hbm %s1027_s0, 192 }
  0x16   :  { %p770_p8 = scmp.ne.s32.totalorder %s1027_s0, %s769_s15  ;;  %p773_p9 = scmp.lt.u32.totalorder %s769_s15, %s1027_s0 }
  0x18   :  { %p775_p10 = pnand %p773_p9, %p770_p8 }
  0x1a   :  { %778 = shalt.err (!%p775_p10)
}
  0x1b   :  { %s779_s20 = scalar_lea.vmem %s910_s24, 192  ;;  %p784_p12 = scmp.lt.s32.totalorder %s910_s24, %s910_s24 }
  0x1c   :  { %p780_p11 = scmp.ne.s32.totalorder %s910_s24, %s779_s20  ;;  %p785_p13 = scmp.lt.s32.totalorder %s779_s20, %s779_s20 }
  0x1e   :  { %p786_p0 = por %p785_p13, %p784_p12 }
  0x20   :  { %p787_p1 = pnand %p786_p0, %p780_p11 }
  0x22   :  { %790 = shalt.err (!%p787_p1)
}
  0x23   :  { %26 = dma.hbm_to_vmem [thread:$0]  %s1027_s0, 192, %s910_s24, [#allocation3], %s867_s9, %s867_s9, %s868_s10  }
  0x24   :  { %s869_s22 = smov [#allocation7]   ;;  %s870_s25 = smov [#allocation8]  }
  0x25   :  { %s44_s23 = sshll.u32 %s869_s22, 4  ;;  %s56_s26 = sshll.u32 %s870_s25, 4  ;;  %s45_s23 = int_to_ptr.vmem [resolvable:$true] %s44_s23  ;;  %s947_s26 = int_to_ptr.vmem [resolvable:$true] %s56_s26 }
  0x26   :  { %s791_s29 = scalar_lea.hbm %s1029_s2, 1024 }
  0x27   :  { %p792_p2 = scmp.ne.s32.totalorder %s1029_s2, %s791_s29  ;;  %p795_p3 = scmp.lt.u32.totalorder %s791_s29, %s1029_s2 }
  0x29   :  { %p797_p4 = pnand %p795_p3, %p792_p2 }
  0x2b   :  { %800 = shalt.err (!%p797_p4)
}
  0x2c   :  { %s801_s0 = scalar_lea.vmem %s45_s23, 1024  ;;  %p806_p6 = scmp.lt.s32.totalorder %s45_s23, %s45_s23 }
  0x2d   :  { %p802_p5 = scmp.ne.s32.totalorder %s45_s23, %s801_s0  ;;  %p807_p7 = scmp.lt.s32.totalorder %s801_s0, %s801_s0 }
  0x2f   :  { %p808_p8 = por %p807_p7, %p806_p6 }
  0x31   :  { %p809_p9 = pnand %p808_p8, %p802_p5 }
  0x33   :  { %812 = shalt.err (!%p809_p9)
}
  0x34   :  { %50 = dma.hbm_to_vmem [thread:$0]  %s1029_s2, 1024, %s45_s23, [#allocation6], %s867_s9, %s867_s9, %s868_s10  }
  0x35   :  { %s813_s15 = scalar_lea.hbm %s1030_s3, 1024 }
  0x36   :  { %p814_p10 = scmp.ne.s32.totalorder %s1030_s3, %s813_s15  ;;  %p817_p11 = scmp.lt.u32.totalorder %s813_s15, %s1030_s3 }
  0x38   :  { %p819_p12 = pnand %p817_p11, %p814_p10 }
  0x3a   :  { %822 = shalt.err (!%p819_p12)
}
  0x3b   :  { %s823_s20 = scalar_lea.vmem %s947_s26, 1024  ;;  %p828_p0 = scmp.lt.s32.totalorder %s947_s26, %s947_s26 }
  0x3c   :  { %p824_p13 = scmp.ne.s32.totalorder %s947_s26, %s823_s20  ;;  %p829_p1 = scmp.lt.s32.totalorder %s823_s20, %s823_s20 }
  0x3e   :  { %p830_p2 = por %p829_p1, %p828_p0 }
  0x40   :  { %p831_p3 = pnand %p830_p2, %p824_p13 }
  0x42   :  { %834 = shalt.err (!%p831_p3)
}
  0x43   :  { %62 = dma.hbm_to_vmem [thread:$0]  %s1030_s3, 1024, %s947_s26, [#allocation9], %s867_s9, %s867_s9, %s868_s10  }
  0x44   :  { %857 = dma.done.wait [#allocation3], 192  }
  0x45   :  { %858 = vsyncadd [#allocation3], 4294967104 }
  0x46   :  { %859 = dma.done.wait [#allocation6], 2048  }
  0x47   :  { %860 = vsyncadd [#allocation6], 4294965248 }
  0x48   :  { %861 = dma.done.wait [#allocation9], 1024  }
  0x49   :  { %862 = vsyncadd [#allocation9], 4294966272  ;;  %v717_v0 = vld [vmem:[#allocation5] sm:$0xff]   ;;  %v718_v1 = vld [vmem:[#allocation5 + $0x8] sm:$0xff]   ;;  %v80_v18 = vlaneseq  ;;  %v871_v27 = vmov 0.0  }
  0x4a   :  { %647 = vmatprep.subr.bf16.mxu0 %v717_v0  ;;  %v719_v2 = vld [vmem:[#allocation5 + $0x10] sm:$0xff]   ;;  %v720_v3 = vld [vmem:[#allocation5 + $0x18] sm:$0xff]   ;;  %v721_v5 = vld [vmem:[#allocation5 + $0x20] sm:$0xff]  }
  0x4b   :  { %648 = vmatpush3.bf16.msra.mxu0 %v717_v0  ;;  %v725_v4 = vld [vmem:[#allocation2] sm:$0xff]   ;;  %v722_v6 = vld [vmem:[#allocation5 + $0x28] sm:$0xff]   ;;  %v726_v9 = vld [vmem:[#allocation2 + $0x8] ss:$0 sps:$4 sm:$0xff]   ;;  %v81_v19 = vshrl.u32 %v80_v18, 7 }
  0x4c   :  { %649 = vmatprep.subr.bf16.mxu0 %v718_v1  ;;  %663 = vmatprep.mubr.bf16.mxu0 %v725_v4  ;;  %v723_v7 = vld [vmem:[#allocation5 + $0x30] sm:$0xff]   ;;  %v724_v8 = vld [vmem:[#allocation5 + $0x38] sm:$0xff]   ;;  %v727_v10 = vld [vmem:[#allocation7] sm:$0xff]  }
  0x4d   :  { %667 = vmatprep.subr.bf16.mxu1 %v727_v10  ;;  %v728_v11 = vld [vmem:[#allocation7 + $0x8] sm:$0xff]   ;;  %v729_v12 = vld [vmem:[#allocation7 + $0x10] sm:$0xff]   ;;  %v730_v13 = vld [vmem:[#allocation7 + $0x18] sm:$0xff]   ;;  %v83_v20 = vadd.s32 16, %v81_v19  ;;  %v993_v61 = vsub.s32 0, %v81_v19 }
  0x4e   :  { %668 = vmatpush3.bf16.msra.mxu1 %v727_v10  ;;  %v731_v14 = vld [vmem:[#allocation7 + $0x20] sm:$0xff]   ;;  %v732_v15 = vld [vmem:[#allocation7 + $0x28] sm:$0xff]   ;;  %v733_v16 = vld [vmem:[#allocation7 + $0x30] sm:$0xff]  }
  0x4f   :  { %650 = vmatpush3.bf16.msra.mxu0 %v718_v1  ;;  %669 = vmatprep.subr.bf16.mxu1 %v728_v11  ;;  %v734_v17 = vld [vmem:[#allocation7 + $0x38] sm:$0xff]   ;;  %v588_v21 = vld [vmem:[%s1031_s4] ss:$0 sm:$0xff]  ;;  %vm86_vm0 = vcmp.lt.s32.totalorder %v83_v20, 20  ;;  %v253_v60 = vld [vmem:[%s1031_s4 + $0x1] sm:$0x1] }
  0x50   :  { %651 = vmatprep.subr.bf16.mxu0 %v719_v2  ;;  %v987_v28 = vsel %vm86_vm0, 1.0, %v871_v27  ;;  %v257_v0 = vld [vmem:[%s1031_s4 + $0x2] sm:$0x1]  ;;  %v740_v18 = vld [vmem:[#allocation8 + $0x28] sm:$0xff]   ;;  %v742_v20 = vld [vmem:[#allocation8 + $0x38] sm:$0xff]  }
  0x51   :  { %v741_v19 = vld [vmem:[#allocation8 + $0x30] sm:$0xff]  }
  0x52   :  { %670 = vmatpush3.bf16.msra.mxu1 %v728_v11 }
  0x53   :  { %652 = vmatpush3.bf16.msra.mxu0 %v719_v2  ;;  %671 = vmatprep.subr.bf16.mxu1 %v729_v12 }
  0x54   :  { %653 = vmatprep.subr.bf16.mxu0 %v720_v3 }
  0x56   :  { %672 = vmatpush3.bf16.msra.mxu1 %v729_v12 }
  0x57   :  { %654 = vmatpush3.bf16.msra.mxu0 %v720_v3  ;;  %673 = vmatprep.subr.bf16.mxu1 %v730_v13 }
  0x58   :  { %655 = vmatprep.subr.bf16.mxu0 %v721_v5 }
  0x5a   :  { %674 = vmatpush3.bf16.msra.mxu1 %v730_v13  ;;  %v735_v13 = vld [vmem:[#allocation8] sm:$0xff]  }
  0x5b   :  { %656 = vmatpush3.bf16.msra.mxu0 %v721_v5  ;;  %675 = vmatprep.subr.bf16.mxu1 %v731_v14 }
  0x5c   :  { %657 = vmatprep.subr.bf16.mxu0 %v722_v6 }
  0x5e   :  { %676 = vmatpush3.bf16.msra.mxu1 %v731_v14  ;;  %v736_v14 = vld [vmem:[#allocation8 + $0x8] sm:$0xff]  }
  0x5f   :  { %658 = vmatpush3.bf16.msra.mxu0 %v722_v6  ;;  %677 = vmatprep.subr.bf16.mxu1 %v732_v15 }
  0x60   :  { %659 = vmatprep.subr.bf16.mxu0 %v723_v7 }
  0x62   :  { %678 = vmatpush3.bf16.msra.mxu1 %v732_v15  ;;  %v737_v15 = vld [vmem:[#allocation8 + $0x10] sm:$0xff]  }
  0x63   :  { %660 = vmatpush3.bf16.msra.mxu0 %v723_v7  ;;  %679 = vmatprep.subr.bf16.mxu1 %v733_v16 }
  0x64   :  { %661 = vmatprep.subr.bf16.mxu0 %v724_v8 }
  0x66   :  { %680 = vmatpush3.bf16.msra.mxu1 %v733_v16  ;;  %v738_v16 = vld [vmem:[#allocation8 + $0x18] sm:$0xff]  }
  0x67   :  { %662 = vmatpush3.bf16.msra.mxu0 %v724_v8  ;;  %681 = vmatprep.subr.bf16.mxu1 %v734_v17 }
  0x68   :  { %687 = vmatprep.subr.bf16.mxu0 %v735_v13 }
  0x6a   :  { %664 = vmatmul.mubr.bf16.vlgmr.msra.gmra.mrb[0].mxu0 %v726_v9  ;;  %682 = vmatpush3.bf16.msra.mxu1 %v734_v17  ;;  %v739_v17 = vld [vmem:[#allocation8 + $0x20] sm:$0xff]  }
  0x6b   :  { %688 = vmatpush3.bf16.msra.mxu0 %v735_v13 }
  0x6c   :  { %689 = vmatprep.subr.bf16.mxu0 %v736_v14 }
  0x6f   :  { %690 = vmatpush3.bf16.msra.mxu0 %v736_v14 }
  0x70   :  { %691 = vmatprep.subr.bf16.mxu0 %v737_v15 }
  0x73   :  { %692 = vmatpush3.bf16.msra.mxu0 %v737_v15 }
  0x74   :  { %693 = vmatprep.subr.bf16.mxu0 %v738_v16 }
  0x77   :  { %694 = vmatpush3.bf16.msra.mxu0 %v738_v16 }
  0x78   :  { %695 = vmatprep.subr.bf16.mxu0 %v739_v17 }
  0x7b   :  { %696 = vmatpush3.bf16.msra.mxu0 %v739_v17 }
  0x7c   :  { %697 = vmatprep.subr.bf16.mxu0 %v740_v18 }
  0x7f   :  { %698 = vmatpush3.bf16.msra.mxu0 %v740_v18 }
  0x80   :  { %699 = vmatprep.subr.bf16.mxu0 %v741_v19 }
  0x83   :  { %700 = vmatpush3.bf16.msra.mxu0 %v741_v19 }
  0x84   :  { %701 = vmatprep.subr.bf16.mxu0 %v742_v20 }
  0x87   :  { %702 = vmatpush3.bf16.msra.mxu0 %v742_v20 }
 0x13d   :  { %v665_v22 = vpop.f32.mrb[0].mxu0 }
 0x13e   :  { %v218_v23 = vadd.f32 %v665_v22, %v588_v21  ;;  %v209_v24 = vpop.f32.mrb[1].mxu0 }
 0x13f   :  { %v210_v25 = vadd.f32 %v588_v21, %v209_v24  ;;  %v666_v26 = vpop.f32.mrb[2].mxu0 }
 0x140   :  { %v225_v29 = vmax.f32 %v218_v23, 0.0  ;;  %v212_v30 = vpop.f32.mrb[3].mxu0 }
 0x141   :  { %v223_v31 = vmax.f32 %v210_v25, 0.0  ;;  %v213_v32 = vadd.f32 %v588_v21, %v212_v30  ;;  %v599_v21 = vld [vmem:[%s1031_s4 + $0x3] ss:$0 sm:$0xff] }
 0x142   :  { %v228_v33 = vmul.f32 %v987_v28, %v225_v29 }
 0x143   :  { %v224_v34 = vmax.f32 %v213_v32, 0.0  ;;  %v238_v35 = vmul.f32 %v223_v31, %v223_v31 }
 0x144   :  { %v240_v38 = vmul.f32 %v228_v33, %v228_v33 }
 0x145   :  { %v229_v36 = vadd.f32 %v224_v34, %v223_v31  ;;  %v239_v37 = vmul.f32 %v224_v34, %v224_v34 }
 0x147   :  { %v230_v39 = vadd.f32 %v229_v36, %v228_v33  ;;  %v241_v40 = vadd.f32 %v239_v37, %v238_v35 }
 0x149   :  { %v231_v41 = vrot.slane %v230_v39, 4  ;;  %v242_v42 = vadd.f32 %v241_v40, %v240_v38 }
 0x14b   :  { %v232_v43 = vadd.f32 %v231_v41, %v230_v39  ;;  %v243_v44 = vrot.slane %v242_v42, 4 }
 0x14d   :  { %v233_v45 = vrot.slane %v232_v43, 2  ;;  %v244_v46 = vadd.f32 %v243_v44, %v242_v42 }
 0x14f   :  { %v234_v47 = vadd.f32 %v233_v45, %v232_v43  ;;  %v245_v48 = vrot.slane %v244_v46, 2 }
 0x151   :  { %v235_v49 = vrot.slane %v234_v47, 1  ;;  %v246_v50 = vadd.f32 %v245_v48, %v244_v46 }
 0x153   :  { %v247_v51 = vrot.slane %v246_v50, 1  ;;  %v236_v52 = vadd.f32 %v235_v49, %v234_v47 }
 0x155   :  { %v248_v53 = vadd.f32 %v247_v51, %v246_v50  ;;  %v237_v54 = vmul.f32 0.05, %v236_v52 }
 0x157   :  { %v249_v55 = vmul.f32 0.05, %v248_v53  ;;  %v250_v56 = vmul.f32 %v237_v54, %v237_v54 }
 0x159   :  { %v251_v57 = vsub.f32 %v249_v55, %v250_v56 }
 0x15b   :  { %v252_v58 = vmax.f32 %v251_v57, 0.0 }
 0x15d   :  { %v254_v59 = vadd.f32 1e-05, %v252_v58  ;;  %v423_v58 = vld [vmem:[%s1031_s4 + $0x4] sm:$0x1] }
 0x15f   :  { %743 = vrsqrt.f32 %v254_v59 }
 0x169   :  { %v744_v62 = vpop.eup %743 }
 0x16a   :  { %v256_v63 = vmul.f32 %v744_v62, %v253_v60  ;;  %v427_v62 = vld [vmem:[%s1031_s4 + $0x5] sm:$0x1]  ;;  %s872_s4 = smov [#allocation10]  }
 0x16b   :  { %s573_s11 = sshll.u32 %s872_s4, 4  ;;  %s574_s11 = int_to_ptr.vmem [resolvable:$true] %s573_s11 }
 0x16c   :  { %v258_v1 = vmul.f32 %v256_v63, %v237_v54  ;;  %v263_v2 = vrot.slane %v256_v63, %v993_v61  ;;  %s835_s0 = scalar_lea.vmem %s574_s11, 384  ;;  %p840_p5 = scmp.lt.s32.totalorder %s574_s11, %s574_s11 }
 0x16d   :  { %p836_p4 = scmp.ne.s32.totalorder %s574_s11, %s835_s0  ;;  %p841_p6 = scmp.lt.s32.totalorder %s835_s0, %s835_s0 }
 0x16e   :  { %v259_v3 = vsub.f32 %v257_v0, %v258_v1  ;;  %v264_v4 = vmul.f32 %v263_v2, %v223_v31  ;;  %v265_v5 = vmul.f32 %v263_v2, %v224_v34  ;;  %v266_v6 = vmul.f32 %v263_v2, %v225_v29 }
 0x16f   :  { %p842_p7 = por %p841_p6, %p840_p5 }
 0x170   :  { %v270_v7 = vrot.slane %v259_v3, %v993_v61 }
 0x171   :  { %p843_p8 = pnand %p842_p7, %p836_p4 }
 0x172   :  { %v271_v8 = vadd.f32 %v270_v7, %v264_v4  ;;  %v272_v9 = vadd.f32 %v270_v7, %v265_v5  ;;  %v273_v10 = vadd.f32 %v270_v7, %v266_v6 }
 0x174   :  { %v274_v11 = vpack.c.bf16 %v272_v9, %v271_v8  ;;  %v275_v12 = vpack.c.bf16 %v273_v10, %v273_v10 }
 0x176   :  { %683 = vmatprep.mubr.bf16.mxu1 %v274_v11  ;;  %v608_v11 = vld [vmem:[%s1032_s5] ss:$0 sm:$0xff] }
 0x177   :  { %684 = vmatmul.mubr.bf16.vlgmr.msra.gmra.mrb[0].mxu1 %v275_v12 }
 0x24a   :  { %v685_v22 = vpop.f32.mrb[0].mxu1 }
 0x24b   :  { %v388_v23 = vadd.f32 %v685_v22, %v599_v21  ;;  %v379_v24 = vpop.f32.mrb[1].mxu1 }
 0x24c   :  { %v380_v25 = vadd.f32 %v599_v21, %v379_v24  ;;  %v686_v26 = vpop.f32.mrb[2].mxu1 }
 0x24d   :  { %v395_v27 = vmax.f32 %v388_v23, 0.0  ;;  %v382_v29 = vpop.f32.mrb[3].mxu1 }
 0x24e   :  { %v393_v30 = vmax.f32 %v380_v25, 0.0  ;;  %v383_v31 = vadd.f32 %v599_v21, %v382_v29 }
 0x24f   :  { %v398_v32 = vmul.f32 %v987_v28, %v395_v27 }
 0x250   :  { %v394_v33 = vmax.f32 %v383_v31, 0.0  ;;  %v408_v34 = vmul.f32 %v393_v30, %v393_v30 }
 0x251   :  { %v410_v37 = vmul.f32 %v398_v32, %v398_v32 }
 0x252   :  { %v399_v35 = vadd.f32 %v394_v33, %v393_v30  ;;  %v409_v36 = vmul.f32 %v394_v33, %v394_v33 }
 0x254   :  { %v400_v38 = vadd.f32 %v399_v35, %v398_v32  ;;  %v411_v39 = vadd.f32 %v409_v36, %v408_v34 }
 0x256   :  { %v401_v40 = vrot.slane %v400_v38, 4  ;;  %v412_v41 = vadd.f32 %v411_v39, %v410_v37 }
 0x258   :  { %v402_v42 = vadd.f32 %v401_v40, %v400_v38  ;;  %v413_v43 = vrot.slane %v412_v41, 4 }
 0x25a   :  { %v403_v44 = vrot.slane %v402_v42, 2  ;;  %v414_v45 = vadd.f32 %v413_v43, %v412_v41 }
 0x25c   :  { %v404_v46 = vadd.f32 %v403_v44, %v402_v42  ;;  %v415_v47 = vrot.slane %v414_v45, 2 }
 0x25e   :  { %v405_v48 = vrot.slane %v404_v46, 1  ;;  %v416_v49 = vadd.f32 %v415_v47, %v414_v45 }
 0x260   :  { %v406_v50 = vadd.f32 %v405_v48, %v404_v46  ;;  %v417_v51 = vrot.slane %v416_v49, 1 }
 0x262   :  { %v407_v28 = vmul.f32 0.05, %v406_v50  ;;  %v418_v52 = vadd.f32 %v417_v51, %v416_v49 }
 0x264   :  { %v419_v53 = vmul.f32 0.05, %v418_v52  ;;  %v420_v54 = vmul.f32 %v407_v28, %v407_v28 }
 0x266   :  { %v421_v55 = vsub.f32 %v419_v53, %v420_v54 }
 0x268   :  { %v422_v56 = vmax.f32 %v421_v55, 0.0 }
 0x26a   :  { %v424_v57 = vadd.f32 1e-05, %v422_v56 }
 0x26c   :  { %745 = vrsqrt.f32 %v424_v57 }
 0x276   :  { %v746_v59 = vpop.eup %745 }
 0x277   :  { %v426_v60 = vmul.f32 %v746_v59, %v423_v58 }
 0x279   :  { %v428_v63 = vmul.f32 %v426_v60, %v407_v28  ;;  %v433_v0 = vrot.slane %v426_v60, %v993_v61 }
 0x27b   :  { %v435_v1 = vmul.f32 %v433_v0, %v394_v33  ;;  %v429_v2 = vsub.f32 %v427_v62, %v428_v63  ;;  %v434_v3 = vmul.f32 %v433_v0, %v393_v30  ;;  %v436_v4 = vmul.f32 %v433_v0, %v395_v27 }
 0x27d   :  { %v440_v5 = vrot.slane %v429_v2, %v993_v61 }
 0x27f   :  { %v441_v6 = vadd.f32 %v440_v5, %v434_v3  ;;  %v442_v7 = vadd.f32 %v440_v5, %v435_v1  ;;  %v443_v8 = vadd.f32 %v440_v5, %v436_v4 }
 0x281   :  { %v444_v9 = vpack.c.bf16 %v442_v7, %v441_v6  ;;  %v445_v10 = vpack.c.bf16 %v443_v8, %v443_v8 }
 0x283   :  { %703 = vmatprep.mubr.bf16.mxu0 %v444_v9 }
 0x284   :  { %704 = vmatmul.mubr.bf16.vlgmr.msra.gmra.mrb[4].mxu0 %v445_v10 }
 0x357   :  { %v705_v12 = vpop.f32.mrb[4].mxu0 }
 0x358   :  { %v560_v13 = vadd.f32 %v705_v12, %v608_v11  ;;  %v551_v14 = vpop.f32.mrb[5].mxu0 }
 0x359   :  { %v552_v15 = vadd.f32 %v608_v11, %v551_v14  ;;  %v706_v16 = vpop.f32.mrb[6].mxu0 }
 0x35a   :  { %567 = vst [vmem:[#allocation10 + $0x10] sm:$0xff] %v560_v13  ;;  %v554_v61 = vpop.f32.mrb[7].mxu0 }
 0x35b   :  { %565 = vst [vmem:[#allocation10] sm:$0xff] %v552_v15  ;;  %v555_v17 = vadd.f32 %v608_v11, %v554_v61 }
 0x35d   :  { %566 = vst [vmem:[#allocation10 + $0x8] sm:$0xff] %v555_v17 }
 0x35e   :  { %846 = shalt.err (!%p843_p8)
}
 0x35f   :  { %s847_s12 = scalar_lea.hbm %s1033_s6, 384 }
 0x360   :  { %p848_p9 = scmp.ne.s32.totalorder %s1033_s6, %s847_s12  ;;  %p851_p10 = scmp.lt.u32.totalorder %s847_s12, %s1033_s6 }
 0x362   :  { %p853_p11 = pnand %p851_p10, %p848_p9 }
 0x364   :  { %856 = shalt.err (!%p853_p11)
}
 0x365   :  { %s873_s17 = smov 128   ;;  %s874_s18 = smov 8  }
 0x366   :  { %579 = dma.vmem_to_hbm [thread:$0]  %s574_s11, 384, %s1033_s6, [#allocation4], %s873_s17, %s873_s17, %s874_s18  }
 0x367   :  { %863 = dma.done.wait [#allocation4], 384  }
 0x368   :  { %864 = vsyncadd [#allocation4], 4294966912 }
 0x369   :  { %583 = vsyncpa [#allocation3], 1 }
 0x36a   :  { %584 = vsyncpa [#allocation6], 1 }
 0x36b   :  { %585 = vsyncpa [#allocation9], 1 }
 0x36c   :  { %586 = vsyncpa [#allocation4], 1 }

</bundles_post_ra>
